<compile_context>
chip_gen: v7x
topology: tpu7x:2x2x1
jax: 0.10.0
libtpu: 0.0.40
codegen_flags: <defaults>
</compile_context>

<pallas_src>
import jax
import jax.numpy as jnp
from jax.experimental import pallas as pl
from jax.experimental.pallas import tpu as pltpu


# ----------------------------------------------------------------------------
# Fused kernel: per-sample cross entropy for BOTH networks (reduction='none')
#   loss_i = logsumexp(logits_i) - logits_i[label_i]
# ----------------------------------------------------------------------------
def _ce_pair_kernel(y1_ref, y2_ref, lab1_ref, lab2_ref, loss1_ref, loss2_ref):
    # Shared class-index iota for this tile (hoisted: JAX doesn't CSE
    # broadcast_in_dim, so build it once and reuse for both nets).
    cls = jax.lax.broadcasted_iota(jnp.int32, y1_ref.shape, 1)        # [T, C]

    def _ce(x_ref, lab_ref, out_ref):
        x = x_ref[...].astype(jnp.float32)                            # [T, C]
        lab = lab_ref[...]                                            # [T, 1] int32
        picked = jnp.sum(jnp.where(cls == lab, x, 0.0),
                         axis=-1, keepdims=True)                      # [T, 1]
        m = jnp.max(x, axis=-1, keepdims=True)                        # [T, 1]
        lse = m + jnp.log(jnp.sum(jnp.exp(x - m), axis=-1, keepdims=True))
        out_ref[...] = lse - picked                                   # [T, 1]

    _ce(y1_ref, lab1_ref, loss1_ref)
    _ce(y2_ref, lab2_ref, loss2_ref)


def _choose_tile_n(n, c, itemsize):
    # Keep one logits tile <= ~2 MiB: 2 logits inputs x 2 double-buffers
    # ~= 8 MiB of VMEM, safe under v5e's 16 MiB and v7x's 32 MiB scoped limits.
    cap = max(8, ((2 << 20) // max(1, c * itemsize)) // 8 * 8)
    cap = min(cap, 1024)
    if n <= cap:
        return n          # full-dim block is always layout-legal
    return cap            # multiple of 8; partial last tile handled by Pallas


def ce_per_sample_pair(y_1, y_2, labels_1, labels_2):
    """Per-sample CE for both nets in one pallas_call. Returns (loss_1, loss_2)."""
    n, c = y_1.shape
    lab1 = labels_1.astype(jnp.int32).reshape(n, 1)
    lab2 = labels_2.astype(jnp.int32).reshape(n, 1)

    tile_n = _choose_tile_n(n, c, jnp.dtype(y_1.dtype).itemsize)
    grid = (pl.cdiv(n, tile_n),)

    loss_1, loss_2 = pl.pallas_call(
        _ce_pair_kernel,
        out_shape=(jax.ShapeDtypeStruct((n, 1), jnp.float32),
                   jax.ShapeDtypeStruct((n, 1), jnp.float32)),
        grid=grid,
        in_specs=[
            pl.BlockSpec((tile_n, c), lambda i: (i, 0)),
            pl.BlockSpec((tile_n, c), lambda i: (i, 0)),
            pl.BlockSpec((tile_n, 1), lambda i: (i, 0)),
            pl.BlockSpec((tile_n, 1), lambda i: (i, 0)),
        ],
        out_specs=(
            pl.BlockSpec((tile_n, 1), lambda i: (i, 0)),
            pl.BlockSpec((tile_n, 1), lambda i: (i, 0)),
        ),
        compiler_params=pltpu.CompilerParams(
            dimension_semantics=("parallel",)),
    )(y_1, y_2, lab1, lab2)

    return loss_1[:, 0], loss_2[:, 0]


# ----------------------------------------------------------------------------
# CTLoss2.forward equivalent
# ----------------------------------------------------------------------------
def ct_loss2(y_1, y_2, y_noise, y_noise2, forget_rate, ind, noise_or_not):
    """
    y_1, y_2           : [N, C] float logits (f32 or bf16)
    y_noise, y_noise2  : [N]    int labels
    forget_rate        : python float
    ind                : [N]    int indices into the dataset
    noise_or_not       : [M]    float (0/1) clean-label indicator over dataset
    """
    n, _ = y_1.shape

    # per-sample cross entropy for both nets (single fused Pallas kernel)
    loss_1, loss_2 = ce_per_sample_pair(y_1, y_2, y_noise, y_noise2)

    # np.argsort equivalent — no Pallas sort primitive; done in JAX glue.
    # (kept as a full argsort so ind_noisy_* ordering matches the reference)
    ind_1_sorted = jnp.argsort(loss_1)
    ind_2_sorted = jnp.argsort(loss_2)

    remember_rate = 1.0 - forget_rate
    num_remember = int(remember_rate * n)           # static python int

    ind_1_update = ind_1_sorted[:num_remember]
    ind_2_update = ind_2_sorted[:num_remember]
    ind_noisy_1 = ind_1_sorted[num_remember:]
    ind_noisy_2 = ind_2_sorted[num_remember:]

    pure_ratio_1 = jnp.sum(jnp.take(noise_or_not, jnp.take(ind, ind_1_update))) \
        / float(num_remember)
    pure_ratio_2 = jnp.sum(jnp.take(noise_or_not, jnp.take(ind, ind_2_update))) \
        / float(num_remember)

    # cross-teaching means: F.cross_entropy(y_1[ind_2_update], y_noise[ind_2_update])
    # is exactly mean(loss_1[ind_2_update]) — reuse the per-sample losses
    # instead of re-gathering logits and recomputing logsumexp.
    loss_1_update = jnp.mean(jnp.take(loss_1, ind_2_update))
    loss_2_update = jnp.mean(jnp.take(loss_2, ind_1_update))

    return (loss_1_update, loss_2_update, pure_ratio_1, pure_ratio_2,
            ind_noisy_1, ind_noisy_2)


if __name__ == "__main__":
    key = jax.random.PRNGKey(0)
    k1, k2, k3, k4, k5, k6 = jax.random.split(key, 6)

    N = 8          # batch
    C = 16         # classes
    M = 32         # dataset size
    forget_rate = 0.25

    y_1 = jax.random.normal(k1, (N, C), dtype=jnp.float32)
    y_2 = jax.random.normal(k2, (N, C), dtype=jnp.float32)
    y_noise = jax.random.randint(k3, (N,), 0, C, dtype=jnp.int32)
    y_noise2 = jax.random.randint(k4, (N,), 0, C, dtype=jnp.int32)
    ind = jax.random.permutation(k5, jnp.arange(M, dtype=jnp.int32))[:N]
    noise_or_not = (jax.random.uniform(k6, (M,)) > 0.3).astype(jnp.float32)

    out = ct_loss2(y_1, y_2, y_noise, y_noise2, forget_rate, ind, noise_or_not)
    out = jax.block_until_ready(out)
    (loss_1_update, loss_2_update, pure_ratio_1, pure_ratio_2,
     ind_noisy_1, ind_noisy_2) = out

    # --- sanity check against a pure-JAX reference ---------------------------
    def ref_ce(logits, labels):
        ls = jax.nn.log_softmax(logits.astype(jnp.float32), axis=-1)
        return -jnp.take_along_axis(ls, labels[:, None], axis=-1)[:, 0]

    ref_l1 = ref_ce(y_1, y_noise)
    ref_l2 = ref_ce(y_2, y_noise2)
    ker_l1, ker_l2 = ce_per_sample_pair(y_1, y_2, y_noise, y_noise2)
    assert jnp.allclose(ref_l1, ker_l1, atol=1e-5), "per-sample CE (net 1) mismatch"
    assert jnp.allclose(ref_l2, ker_l2, atol=1e-5), "per-sample CE (net 2) mismatch"

    num_remember = int((1.0 - forget_rate) * N)
    ref_i1 = jnp.argsort(ref_l1)[:num_remember]
    ref_i2 = jnp.argsort(ref_l2)[:num_remember]
    ref_loss_1_update = jnp.mean(ref_l1[ref_i2])
    ref_loss_2_update = jnp.mean(ref_l2[ref_i1])
    assert jnp.allclose(ref_loss_1_update, loss_1_update, atol=1e-5), "loss_1_update mismatch"
    assert jnp.allclose(ref_loss_2_update, loss_2_update, atol=1e-5), "loss_2_update mismatch"

    ref_pr1 = jnp.sum(noise_or_not[ind[ref_i1]]) / float(num_remember)
    ref_pr2 = jnp.sum(noise_or_not[ind[ref_i2]]) / float(num_remember)
    assert jnp.allclose(ref_pr1, pure_ratio_1, atol=1e-6), "pure_ratio_1 mismatch"
    assert jnp.allclose(ref_pr2, pure_ratio_2, atol=1e-6), "pure_ratio_2 mismatch"

    print("KERNEL_OK")
</pallas_src>

<mosaic_0001>
module attributes {stable_mosaic.version = 11 : i64} {
  func.func @_ce_pair_kernel(%arg0: i32, %arg1: memref<8x16xf32, #tpu.memory_space<vmem>>, %arg2: memref<8x16xf32, #tpu.memory_space<vmem>>, %arg3: memref<8x1xi32, #tpu.memory_space<vmem>>, %arg4: memref<8x1xi32, #tpu.memory_space<vmem>>, %arg5: memref<8x1xf32, #tpu.memory_space<vmem>>, %arg6: memref<8x1xf32, #tpu.memory_space<vmem>>) attributes {dimension_semantics = [#tpu.dimension_semantics<parallel>], iteration_bounds = array<i64: 1>, scalar_prefetch = 0 : i64, scratch_operands = 0 : i64, tpu.core_type = #tpu.core_type<tc>, window_params = [{transform_indices = @transform_0, window_bounds = array<i64: 8, 16>}, {transform_indices = @transform_1, window_bounds = array<i64: 8, 16>}, {transform_indices = @transform_2, window_bounds = array<i64: 8, 1>}, {transform_indices = @transform_3, window_bounds = array<i64: 8, 1>}, {transform_indices = @transform_4, window_bounds = array<i64: 8, 1>}, {transform_indices = @transform_5, window_bounds = array<i64: 8, 1>}]} {
    %0 = tpu.iota {dimensions = array<i32: 1>} : vector<8x16xi32>
    %c0 = arith.constant 0 : index
    %c0_0 = arith.constant 0 : index
    %1 = vector.load %arg1[%c0, %c0_0] : memref<8x16xf32, #tpu.memory_space<vmem>>, vector<8x16xf32>
    %c0_1 = arith.constant 0 : index
    %c0_2 = arith.constant 0 : index
    %2 = vector.load %arg3[%c0_1, %c0_2] : memref<8x1xi32, #tpu.memory_space<vmem>>, vector<8x1xi32>
    %3 = vector.broadcast %2 : vector<8x1xi32> to vector<8x16xi32>
    %4 = arith.cmpi eq, %0, %3 : vector<8x16xi32>
    %cst = arith.constant 0.000000e+00 : f32
    %5 = vector.broadcast %cst : f32 to vector<8x16xf32>
    %6 = arith.select %4, %1, %5 : vector<8x16xi1>, vector<8x16xf32>
    %cst_3 = arith.constant dense<0.000000e+00> : vector<8xf32>
    %7 = vector.multi_reduction <add>, %6, %cst_3 [1] : vector<8x16xf32> to vector<8xf32>
    %8 = vector.shape_cast %7 : vector<8xf32> to vector<8x1xf32>
    %cst_4 = arith.constant dense<0xFF800000> : vector<8xf32>
    %9 = vector.multi_reduction <maximumf>, %1, %cst_4 [1] : vector<8x16xf32> to vector<8xf32>
    %10 = vector.shape_cast %9 : vector<8xf32> to vector<8x1xf32>
    %11 = vector.broadcast %10 : vector<8x1xf32> to vector<8x16xf32>
    %12 = arith.subf %1, %11 : vector<8x16xf32>
    %13 = math.exp %12 : vector<8x16xf32>
    %cst_5 = arith.constant dense<0.000000e+00> : vector<8xf32>
    %14 = vector.multi_reduction <add>, %13, %cst_5 [1] : vector<8x16xf32> to vector<8xf32>
    %15 = vector.shape_cast %14 : vector<8xf32> to vector<8x1xf32>
    %16 = math.log %15 : vector<8x1xf32>
    %17 = arith.addf %10, %16 : vector<8x1xf32>
    %18 = arith.subf %17, %8 : vector<8x1xf32>
    %c0_6 = arith.constant 0 : index
    %c0_7 = arith.constant 0 : index
    %19 = vector.load %arg5[%c0_6, %c0_7] : memref<8x1xf32, #tpu.memory_space<vmem>>, vector<8x1xf32>
    tpu.vector_store %arg5[%c0_6, %c0_7], %18 {strides = array<i32>} : memref<8x1xf32, #tpu.memory_space<vmem>>, vector<8x1xf32>,
    %c0_8 = arith.constant 0 : index
    %c0_9 = arith.constant 0 : index
    %20 = vector.load %arg2[%c0_8, %c0_9] : memref<8x16xf32, #tpu.memory_space<vmem>>, vector<8x16xf32>
    %c0_10 = arith.constant 0 : index
    %c0_11 = arith.constant 0 : index
    %21 = vector.load %arg4[%c0_10, %c0_11] : memref<8x1xi32, #tpu.memory_space<vmem>>, vector<8x1xi32>
    %22 = vector.broadcast %21 : vector<8x1xi32> to vector<8x16xi32>
    %23 = arith.cmpi eq, %0, %22 : vector<8x16xi32>
    %cst_12 = arith.constant 0.000000e+00 : f32
    %24 = vector.broadcast %cst_12 : f32 to vector<8x16xf32>
    %25 = arith.select %23, %20, %24 : vector<8x16xi1>, vector<8x16xf32>
    %cst_13 = arith.constant dense<0.000000e+00> : vector<8xf32>
    %26 = vector.multi_reduction <add>, %25, %cst_13 [1] : vector<8x16xf32> to vector<8xf32>
    %27 = vector.shape_cast %26 : vector<8xf32> to vector<8x1xf32>
    %cst_14 = arith.constant dense<0xFF800000> : vector<8xf32>
    %28 = vector.multi_reduction <maximumf>, %20, %cst_14 [1] : vector<8x16xf32> to vector<8xf32>
    %29 = vector.shape_cast %28 : vector<8xf32> to vector<8x1xf32>
    %30 = vector.broadcast %29 : vector<8x1xf32> to vector<8x16xf32>
    %31 = arith.subf %20, %30 : vector<8x16xf32>
    %32 = math.exp %31 : vector<8x16xf32>
    %cst_15 = arith.constant dense<0.000000e+00> : vector<8xf32>
    %33 = vector.multi_reduction <add>, %32, %cst_15 [1] : vector<8x16xf32> to vector<8xf32>
    %34 = vector.shape_cast %33 : vector<8xf32> to vector<8x1xf32>
    %35 = math.log %34 : vector<8x1xf32>
    %36 = arith.addf %29, %35 : vector<8x1xf32>
    %37 = arith.subf %36, %27 : vector<8x1xf32>
    %c0_16 = arith.constant 0 : index
    %c0_17 = arith.constant 0 : index
    %38 = vector.load %arg6[%c0_16, %c0_17] : memref<8x1xf32, #tpu.memory_space<vmem>>, vector<8x1xf32>
    tpu.vector_store %arg6[%c0_16, %c0_17], %37 {strides = array<i32>} : memref<8x1xf32, #tpu.memory_space<vmem>>, vector<8x1xf32>,
    return
  }
  func.func @transform_0(%arg0: i32) -> (i32, i32) {
    %c0_i32 = arith.constant 0 : i32
    %c0_i32_0 = arith.constant 0 : i32
    return %arg0, %c0_i32 : i32, i32
  }
  func.func @transform_1(%arg0: i32) -> (i32, i32) {
    %c0_i32 = arith.constant 0 : i32
    %c0_i32_0 = arith.constant 0 : i32
    return %arg0, %c0_i32 : i32, i32
  }
  func.func @transform_2(%arg0: i32) -> (i32, i32) {
    %c0_i32 = arith.constant 0 : i32
    %c0_i32_0 = arith.constant 0 : i32
    return %arg0, %c0_i32 : i32, i32
  }
  func.func @transform_3(%arg0: i32) -> (i32, i32) {
    %c0_i32 = arith.constant 0 : i32
    %c0_i32_0 = arith.constant 0 : i32
    return %arg0, %c0_i32 : i32, i32
  }
  func.func @transform_4(%arg0: i32) -> (i32, i32) {
    %c0_i32 = arith.constant 0 : i32
    %c0_i32_0 = arith.constant 0 : i32
    return %arg0, %c0_i32 : i32, i32
  }
  func.func @transform_5(%arg0: i32) -> (i32, i32) {
    %c0_i32 = arith.constant 0 : i32
    %c0_i32_0 = arith.constant 0 : i32
    return %arg0, %c0_i32 : i32, i32
  }
}

</mosaic_0001>

<bundles_post_ra>
// kernel: tpu_custom_call.1
= control target key start
LH: loop header
LB: loop body
LE: loop exit
PB: predicated region body
PF: predicated region fallthrough
CT: control target
= control target key end

     0   :  { %vm28_vm0 = vcmask 130048   ;;  %v90_v2 = vmov 0   ;;  %v19_v11 = vlaneseq  ;;  %vm45_vm3 = vcmask 7168   ;;  %s145_s0 = inlined_call_operand.vmem [shape: f32[8,16], index: 0, kind: input, shape index: {}]   ;;  %s146_s1 = inlined_call_operand.vmem [shape: f32[8,16], index: 1, kind: input, shape index: {}]   ;;  %s147_s2 = inlined_call_operand.vmem [shape: s32[8,1], index: 2, kind: input, shape index: {}]   ;;  %s148_s3 = inlined_call_operand.vmem [shape: s32[8,1], index: 3, kind: input, shape index: {}]   ;;  %s149_s4 = inlined_call_operand.vmem [shape: f32[8,1], index: 4, kind: output, shape index: {0}]   ;;  %s150_s5 = inlined_call_operand.vmem [shape: f32[8,1], index: 5, kind: output, shape index: {1}]  }
   0x1   :  { %v21_v0 = vld [vmem:[%s145_s0] sm:$0xff]  ;;  %80 = vset.pattern.permute.xlu1 %v90_v2  ;;  %81 = vset.pattern.permute.xlu0 %v90_v2 }
   0x2   :  { %v47_v1 = vld [vmem:[%s146_s1] sm:$0xff]  ;;  %v32_v4 = vsel %vm28_vm0, %v21_v0, -inf  ;;  %v20_v15 = vand.u32 127, %v19_v11 }
   0x3   :  { %v22_v3 = vld [vmem:[%s147_s2] sm:$0xff]  ;;  %33 = vmax.xlane.f32.xlu0 %v32_v4  ;;  %v57_v6 = vsel %vm28_vm0, %v47_v1, -inf }
   0x4   :  { %24 = vperm.xlu1 %80, %v22_v3   ;;  %v48_v5 = vld [vmem:[%s148_s3] sm:$0xff] }
   0x7   :  { %58 = vmax.xlane.f32.xlu0 %v57_v6 }
   0x8   :  { %50 = vperm.xlu1 %80, %v48_v5  }
  0x83   :  { %v25_v14 = vpop.permute.xlu1 %24 }
  0x84   :  { %vm26_vm1 = vcmp.eq.s32.totalorder %v20_v15, %v25_v14 }
  0x85   :  { %v27_v18 = vsel %vm26_vm1, %v21_v0, 0.0 }
  0x86   :  { %v29_v20 = vsel %vm28_vm0, %v27_v18, 0.0 }
  0x87   :  { %v51_v16 = vpop.permute.xlu1 %50 }
  0x88   :  { %vm52_vm2 = vcmp.eq.s32.totalorder %v20_v15, %v51_v16 }
  0x89   :  { %v53_v22 = vsel %vm52_vm2, %v47_v1, 0.0 }
  0x8a   :  { %v54_v24 = vsel %vm28_vm0, %v53_v22, 0.0 }
  0x90   :  { %v34_v7 = vpop.xlane.xlu0 %33 }
  0x91   :  { %v35_v8 = vsub.f32 %v21_v0, %v34_v7 }
  0x93   :  { %v36_v9 = vmul.f32 1.442695, %v35_v8 }
  0x94   :  { %v59_v10 = vpop.xlane.xlu0 %58 }
  0x95   :  { %82 = vpow2.f32 %v36_v9  ;;  %v60_v12 = vsub.f32 %v47_v1, %v59_v10 }
  0x97   :  { %v61_v13 = vmul.f32 1.442695, %v60_v12 }
  0x99   :  { %84 = vpow2.f32 %v61_v13 }
  0x9f   :  { %v83_v17 = vpop.eup %82 }
  0xa0   :  { %v38_v19 = vsel %vm28_vm0, %v83_v17, 0.0 }
  0xa1   :  { %39 = vadd.xlane.f32.xlu0 %v38_v19 }
  0xa3   :  { %v85_v21 = vpop.eup %84 }
  0xa4   :  { %v63_v23 = vsel %vm28_vm0, %v85_v21, 0.0 }
  0xa5   :  { %64 = vadd.xlane.f32.xlu1 %v63_v23  ;;  %30 = vadd.xlane.f32.xlu0 %v29_v20 }
  0xa9   :  { %55 = vadd.xlane.f32.xlu0 %v54_v24 }
 0x12e   :  { %v40_v25 = vpop.xlane.xlu0 %39 }
 0x12f   :  { %86 = vlog2.f32 %v40_v25 }
 0x132   :  { %v65_v26 = vpop.xlane.xlu1 %64  ;;  %v31_v29 = vpop.xlane.xlu0 %30 }
 0x133   :  { %88 = vlog2.f32 %v65_v26 }
 0x136   :  { %v56_v35 = vpop.xlane.xlu0 %55 }
 0x139   :  { %v87_v27 = vpop.eup %86 }
 0x13a   :  { %v42_v28 = vmul.f32 0.6931472, %v87_v27 }
 0x13c   :  { %v43_v30 = vadd.f32 %v42_v28, %v34_v7 }
 0x13d   :  { %v89_v31 = vpop.eup %88 }
 0x13e   :  { %v67_v32 = vmul.f32 0.6931472, %v89_v31  ;;  %v44_v33 = vsub.f32 %v43_v30, %v31_v29 }
 0x140   :  { %46 = vst.msk [vmem:[%s149_s4] sm:$0xff] %vm45_vm3, %v44_v33  ;;  %v68_v34 = vadd.f32 %v67_v32, %v59_v10 }
 0x142   :  { %v69_v36 = vsub.f32 %v68_v34, %v56_v35 }
 0x144   :  { %70 = vst.msk [vmem:[%s150_s5] sm:$0xff] %vm45_vm3, %v69_v36 }

</bundles_post_ra>
